<compile_context>
chip_gen: v5e
topology: v5e:2x2
jax: 0.10.0
libtpu: 0.0.40
codegen_flags: <defaults>
</compile_context>

<pallas_src>
import jax
import jax.numpy as jnp
from jax.experimental import pallas as pl
from jax.experimental.pallas import tpu as pltpu


def _round_up(x, m):
    return ((x + m - 1) // m) * m


def _make_dense_layer_kernel(feat_channels, W, pad):
    """Build a fused relu -> 1x1 conv -> relu -> 3x3 conv kernel."""
    n_feats = len(feat_channels)
    col_offsets = []
    off = 0
    for c in feat_channels:
        col_offsets.append(off)
        off += c

    def kernel(*refs):
        x_refs = refs[:n_feats]                      # each (1, c_i, HW) bf16
        w1_ref = refs[n_feats]                       # (Cmid, Cin)     bf16
        w2_ref = refs[n_feats + 1]                   # (9, Cout, Cmid) bf16
        o_ref = refs[n_feats + 2]                    # (1, Cout, HW)   f32
        buf_ref = refs[n_feats + 3]                  # (Cmid, HW+2*pad) bf16

        cmid = buf_ref.shape[0]
        cout = o_ref.shape[1]
        hw = o_ref.shape[2]

        # relu(cat(prev_features)) -> 1x1 conv, accumulated per feature so the
        # concatenated activation is never materialized.
        acc1 = jnp.zeros((cmid, hw), jnp.float32)
        for x_ref, c, coff in zip(x_refs, feat_channels, col_offsets):
            x = jnp.maximum(x_ref[0], 0.0)                       # (c, HW) bf16
            w1_slice = w1_ref[:, pl.ds(coff, c)]                 # (Cmid, c)
            acc1 = acc1 + jnp.dot(w1_slice, x,
                                  preferred_element_type=jnp.float32)
        out1 = jnp.maximum(acc1, 0.0).astype(jnp.bfloat16)       # (Cmid, HW)

        # Zero ONLY the two halo strips (interior is fully overwritten next).
        # Kept per grid step: each core has its own scratch under megacore.
        buf_ref[:, pl.ds(0, pad)] = jnp.zeros((cmid, pad), buf_ref.dtype)
        buf_ref[:, pl.ds(pad + hw, pad)] = jnp.zeros((cmid, pad), buf_ref.dtype)
        buf_ref[:, pl.ds(pad, hw)] = out1

        # Horizontal-halo masks from a single-row iota; selects broadcast.
        col = jax.lax.broadcasted_iota(jnp.int32, (1, hw), 1) % W
        left_ok = col >= 1            # taps with kx == 0 need x-1 >= 0
        right_ok = col < (W - 1)      # taps with kx == 2 need x+1 < W

        # 3x3 conv as 9 tap-accumulated MXU matmuls (no im2col temp).
        acc2 = jnp.zeros((cout, hw), jnp.float32)
        for ky in range(3):
            for kx in range(3):
                d = (ky - 1) * W + (kx - 1)
                tap = buf_ref[:, pl.ds(pad + d, hw)]             # (Cmid, HW)
                if kx == 0:
                    tap = jnp.where(left_ok, tap, jnp.zeros_like(tap))
                elif kx == 2:
                    tap = jnp.where(right_ok, tap, jnp.zeros_like(tap))
                acc2 = acc2 + jnp.dot(w2_ref[ky * 3 + kx], tap,
                                      preferred_element_type=jnp.float32)
        o_ref[0] = acc2.astype(o_ref.dtype)

    return kernel


def dense_layer_forward(prev_features, w1_torch, w2_torch):
    """prev_features: list of NCHW float arrays (not pre-concatenated).
    w1_torch: [Cmid, Cin, 1, 1]   (nn.Conv2d conv1 weight layout)
    w2_torch: [Cout, Cmid, 3, 3]  (nn.Conv2d conv2 weight layout)
    Returns NCHW float32 output matching the PyTorch module."""
    feats = list(prev_features)
    N, _, H, W = feats[0].shape
    feat_channels = tuple(int(f.shape[1]) for f in feats)
    Cin = sum(feat_channels)
    Cmid = int(w1_torch.shape[0])
    Cout = int(w2_torch.shape[0])
    HW = H * W

    # Zero halo must cover the most negative tap offset -(W+1); keep it a
    # multiple of 128 so the interior store stays lane-aligned.
    pad = max(128, _round_up(W + 1, 128))
    assert pad >= W + 1

    # Channels-first, spatial flattened onto lanes (free reshapes only).
    # bf16 operands; both matmuls accumulate in f32.
    xs = [f.reshape(N, c, HW).astype(jnp.bfloat16)
          for f, c in zip(feats, feat_channels)]
    w1 = w1_torch[:, :, 0, 0].astype(jnp.bfloat16)               # (Cmid, Cin)
    w2 = jnp.transpose(w2_torch, (2, 3, 0, 1)).reshape(9, Cout, Cmid)
    w2 = w2.astype(jnp.bfloat16)                                 # tap-major

    kernel = _make_dense_layer_kernel(feat_channels, W, pad)

    in_specs = [pl.BlockSpec((1, c, HW), lambda n: (n, 0, 0))
                for c in feat_channels]
    in_specs += [
        pl.BlockSpec((Cmid, Cin), lambda n: (0, 0)),        # resident weight
        pl.BlockSpec((9, Cout, Cmid), lambda n: (0, 0, 0)), # resident weight
    ]

    flops = 2 * N * HW * (Cmid * Cin + Cout * 9 * Cmid)
    bytes_accessed = (sum(int(x.size) * 2 for x in xs)
                      + int(w1.size) * 2 + int(w2.size) * 2
                      + N * Cout * HW * 4)

    out = pl.pallas_call(
        kernel,
        out_shape=jax.ShapeDtypeStruct((N, Cout, HW), jnp.float32),
        grid_spec=pltpu.PrefetchScalarGridSpec(
            num_scalar_prefetch=0,
            grid=(N,),
            in_specs=in_specs,
            out_specs=pl.BlockSpec((1, Cout, HW), lambda n: (n, 0, 0)),
            scratch_shapes=[pltpu.VMEM((Cmid, HW + 2 * pad), jnp.bfloat16)],
        ),
        compiler_params=pltpu.CompilerParams(
            dimension_semantics=("parallel",)),
        cost_estimate=pl.CostEstimate(
            flops=flops, transcendentals=0, bytes_accessed=bytes_accessed),
    )(*xs, w1, w2)

    # (N, Cout, H*W) -> (N, Cout, H, W): free reshape, no transpose needed.
    return out.reshape(N, Cout, H, W)


def reference_forward(prev_features, w1_torch, w2_torch):
    """Pure-JAX f32 reference (NCHW, same as PyTorch)."""
    x = jnp.concatenate(prev_features, axis=1)
    x = jax.nn.relu(x)
    out1 = jax.lax.conv_general_dilated(
        x, w1_torch, window_strides=(1, 1), padding="VALID",
        dimension_numbers=("NCHW", "OIHW", "NCHW"))
    out1 = jax.nn.relu(out1)
    out2 = jax.lax.conv_general_dilated(
        out1, w2_torch, window_strides=(1, 1), padding=((1, 1), (1, 1)),
        dimension_numbers=("NCHW", "OIHW", "NCHW"))
    return out2


if __name__ == "__main__":
    key = jax.random.PRNGKey(0)
    k1, k2, k3, k4 = jax.random.split(key, 4)

    # Small DenseNet-style shapes: two prev features of 4 channels each.
    N, H, W = 2, 16, 16
    growthrate, bn_size = 4, 2
    c1, c2 = 4, 4
    in_channels = c1 + c2              # 8  (channels of cat(prev_features))
    Cmid = bn_size * growthrate        # 8
    Cout = growthrate                  # 4

    f1 = jax.random.normal(k1, (N, c1, H, W), jnp.float32)
    f2 = jax.random.normal(k2, (N, c2, H, W), jnp.float32)

    # Deterministic Kaiming-like init in PyTorch conv weight layouts.
    w1 = jax.random.normal(k3, (Cmid, in_channels, 1, 1), jnp.float32) \
        * (2.0 / in_channels) ** 0.5
    w2 = jax.random.normal(k4, (Cout, Cmid, 3, 3), jnp.float32) \
        * (2.0 / (Cmid * 9)) ** 0.5

    out = dense_layer_forward([f1, f2], w1, w2)
    out = jax.block_until_ready(out)

    ref = reference_forward([f1, f2], w1, w2)
    assert out.shape == (N, Cout, H, W), out.shape
    # bf16 matmul operands (f32 accumulation) -> looser tolerance vs f32 ref.
    assert jnp.allclose(out, ref, atol=5e-2, rtol=5e-2), \
        float(jnp.max(jnp.abs(out - ref)))

    print("KERNEL_OK")
</pallas_src>

<mosaic_0001>
module attributes {stable_mosaic.version = 11 : i64} {
  func.func @kernel(%arg0: i32, %arg1: memref<1x4x256xbf16, #tpu.memory_space<vmem>>, %arg2: memref<1x4x256xbf16, #tpu.memory_space<vmem>>, %arg3: memref<8x8xbf16, #tpu.memory_space<vmem>>, %arg4: memref<9x4x8xbf16, #tpu.memory_space<vmem>>, %arg5: memref<1x4x256xf32, #tpu.memory_space<vmem>>, %arg6: memref<8x512xbf16, #tpu.memory_space<vmem>>) attributes {dimension_semantics = [#tpu.dimension_semantics<parallel>], iteration_bounds = array<i64: 2>, scalar_prefetch = 0 : i64, scratch_operands = 1 : i64, tpu.core_type = #tpu.core_type<tc>, window_params = [{transform_indices = @transform_0, window_bounds = array<i64: 1, 4, 256>}, {transform_indices = @transform_1, window_bounds = array<i64: 1, 4, 256>}, {pipeline_mode = #tpu.pipeline_mode<synchronous>, transform_indices = @transform_2, window_bounds = array<i64: 8, 8>}, {pipeline_mode = #tpu.pipeline_mode<synchronous>, transform_indices = @transform_3, window_bounds = array<i64: 9, 4, 8>}, {transform_indices = @transform_4, window_bounds = array<i64: 1, 4, 256>}]} {
    %cst = arith.constant 0.000000e+00 : f32
    %0 = vector.broadcast %cst : f32 to vector<8x256xf32>
    %c0 = arith.constant 0 : index
    %c0_0 = arith.constant 0 : index
    %c0_1 = arith.constant 0 : index
    %1 = vector.load %arg1[%c0, %c0_0, %c0_1] : memref<1x4x256xbf16, #tpu.memory_space<vmem>>, vector<1x4x256xbf16>
    %2 = vector.shape_cast %1 : vector<1x4x256xbf16> to vector<4x256xbf16>
    %cst_2 = arith.constant 0.000000e+00 : bf16
    %3 = vector.broadcast %cst_2 : bf16 to vector<4x256xbf16>
    %4 = arith.maximumf %2, %3 : vector<4x256xbf16>
    %c0_3 = arith.constant 0 : index
    %c0_4 = arith.constant 0 : index
    %5 = vector.load %arg3[%c0_3, %c0_4] : memref<8x8xbf16, #tpu.memory_space<vmem>>, vector<8x4xbf16>
    %cst_5 = arith.constant dense<0.000000e+00> : vector<8x256xf32>
    %6 = tpu.matmul %5, %4, %cst_5 {dimension_numbers = #tpu.dot_dimension_numbers<[1], [0], [0], [1], [0, 0, 1, 1], [], []>} : vector<8x4xbf16>, vector<4x256xbf16>, vector<8x256xf32> -> vector<8x256xf32>
    %7 = arith.addf %0, %6 : vector<8x256xf32>
    %c0_6 = arith.constant 0 : index
    %c0_7 = arith.constant 0 : index
    %c0_8 = arith.constant 0 : index
    %8 = vector.load %arg2[%c0_6, %c0_7, %c0_8] : memref<1x4x256xbf16, #tpu.memory_space<vmem>>, vector<1x4x256xbf16>
    %9 = vector.shape_cast %8 : vector<1x4x256xbf16> to vector<4x256xbf16>
    %cst_9 = arith.constant 0.000000e+00 : bf16
    %10 = vector.broadcast %cst_9 : bf16 to vector<4x256xbf16>
    %11 = arith.maximumf %9, %10 : vector<4x256xbf16>
    %c0_10 = arith.constant 0 : index
    %c4 = arith.constant 4 : index
    %12 = vector.load %arg3[%c0_10, %c4] : memref<8x8xbf16, #tpu.memory_space<vmem>>, vector<8x4xbf16>
    %cst_11 = arith.constant dense<0.000000e+00> : vector<8x256xf32>
    %13 = tpu.matmul %12, %11, %cst_11 {dimension_numbers = #tpu.dot_dimension_numbers<[1], [0], [0], [1], [0, 0, 1, 1], [], []>} : vector<8x4xbf16>, vector<4x256xbf16>, vector<8x256xf32> -> vector<8x256xf32>
    %14 = arith.addf %7, %13 : vector<8x256xf32>
    %cst_12 = arith.constant 0.000000e+00 : f32
    %15 = vector.broadcast %cst_12 : f32 to vector<8x256xf32>
    %16 = arith.maximumf %14, %15 : vector<8x256xf32>
    %17 = arith.truncf %16 : vector<8x256xf32> to vector<8x256xbf16>
    %cst_13 = arith.constant 0.000000e+00 : bf16
    %18 = vector.broadcast %cst_13 : bf16 to vector<8x128xbf16>
    %c0_14 = arith.constant 0 : index
    %c0_15 = arith.constant 0 : index
    %19 = vector.load %arg6[%c0_14, %c0_15] : memref<8x512xbf16, #tpu.memory_space<vmem>>, vector<8x128xbf16>
    tpu.vector_store %arg6[%c0_14, %c0_15], %18 {strides = array<i32>} : memref<8x512xbf16, #tpu.memory_space<vmem>>, vector<8x128xbf16>,
    %cst_16 = arith.constant 0.000000e+00 : bf16
    %20 = vector.broadcast %cst_16 : bf16 to vector<8x128xbf16>
    %c0_17 = arith.constant 0 : index
    %c384 = arith.constant 384 : index
    %21 = vector.load %arg6[%c0_17, %c384] : memref<8x512xbf16, #tpu.memory_space<vmem>>, vector<8x128xbf16>
    tpu.vector_store %arg6[%c0_17, %c384], %20 {strides = array<i32>} : memref<8x512xbf16, #tpu.memory_space<vmem>>, vector<8x128xbf16>,
    %c0_18 = arith.constant 0 : index
    %c128 = arith.constant 128 : index
    %22 = vector.load %arg6[%c0_18, %c128] : memref<8x512xbf16, #tpu.memory_space<vmem>>, vector<8x256xbf16>
    tpu.vector_store %arg6[%c0_18, %c128], %17 {strides = array<i32>} : memref<8x512xbf16, #tpu.memory_space<vmem>>, vector<8x256xbf16>,
    %23 = tpu.iota {dimensions = array<i32: 1>} : vector<1x256xi32>
    %c16_i32 = arith.constant 16 : i32
    %c0_i32 = arith.constant 0 : i32
    %24 = arith.cmpi eq, %c16_i32, %c0_i32 : i32
    %c1_i32 = arith.constant 1 : i32
    %25 = arith.select %24, %c1_i32, %c16_i32 : i32
    %26 = vector.broadcast %25 : i32 to vector<1x256xi32>
    %27 = arith.remsi %23, %26 : vector<1x256xi32>
    %c0_i32_19 = arith.constant 0 : i32
    %28 = vector.broadcast %c0_i32_19 : i32 to vector<1x256xi32>
    %29 = arith.cmpi ne, %27, %28 : vector<1x256xi32>
    %c0_i32_20 = arith.constant 0 : i32
    %30 = vector.broadcast %c0_i32_20 : i32 to vector<1x256xi32>
    %31 = arith.cmpi slt, %27, %30 : vector<1x256xi32>
    %c0_i32_21 = arith.constant 0 : i32
    %32 = arith.cmpi slt, %25, %c0_i32_21 : i32
    %33 = vector.broadcast %32 : i1 to vector<1x256xi1>
    %34 = vector.broadcast %33 : vector<1x256xi1> to vector<1x256xi1>
    %35 = arith.xori %31, %34 : vector<1x256xi1>
    %36 = arith.andi %35, %29 : vector<1x256xi1>
    %37 = vector.broadcast %25 : i32 to vector<1x256xi32>
    %38 = arith.addi %27, %37 : vector<1x256xi32>
    %39 = arith.select %36, %38, %27 : vector<1x256xi1>, vector<1x256xi32>
    %c1_i32_22 = arith.constant 1 : i32
    %40 = vector.broadcast %c1_i32_22 : i32 to vector<1x256xi32>
    %41 = arith.cmpi sge, %39, %40 : vector<1x256xi32>
    %c15_i32 = arith.constant 15 : i32
    %42 = vector.broadcast %c15_i32 : i32 to vector<1x256xi32>
    %43 = arith.cmpi slt, %39, %42 : vector<1x256xi32>
    %cst_23 = arith.constant 0.000000e+00 : f32
    %44 = vector.broadcast %cst_23 : f32 to vector<4x256xf32>
    %c0_24 = arith.constant 0 : index
    %c111 = arith.constant 111 : index
    %45 = vector.load %arg6[%c0_24, %c111] : memref<8x512xbf16, #tpu.memory_space<vmem>>, vector<8x256xbf16>
    %cst_25 = arith.constant 0.000000e+00 : bf16
    %46 = vector.broadcast %cst_25 : bf16 to vector<8x256xbf16>
    %47 = vector.shape_cast %41 : vector<1x256xi1> to vector<1x256xi1>
    %48 = vector.broadcast %47 : vector<1x256xi1> to vector<8x256xi1>
    %49 = arith.select %48, %45, %46 : vector<8x256xi1>, vector<8x256xbf16>
    %c0_26 = arith.constant 0 : index
    %c0_27 = arith.constant 0 : index
    %c0_28 = arith.constant 0 : index
    %50 = vector.load %arg4[%c0_26, %c0_27, %c0_28] : memref<9x4x8xbf16, #tpu.memory_space<vmem>>, vector<1x4x8xbf16>
    %51 = vector.shape_cast %50 : vector<1x4x8xbf16> to vector<4x8xbf16>
    %cst_29 = arith.constant dense<0.000000e+00> : vector<4x256xf32>
    %52 = tpu.matmul %51, %49, %cst_29 {dimension_numbers = #tpu.dot_dimension_numbers<[1], [0], [0], [1], [0, 0, 1, 1], [], []>} : vector<4x8xbf16>, vector<8x256xbf16>, vector<4x256xf32> -> vector<4x256xf32>
    %53 = arith.addf %44, %52 : vector<4x256xf32>
    %c0_30 = arith.constant 0 : index
    %c112 = arith.constant 112 : index
    %54 = vector.load %arg6[%c0_30, %c112] : memref<8x512xbf16, #tpu.memory_space<vmem>>, vector<8x256xbf16>
    %c1 = arith.constant 1 : index
    %c0_31 = arith.constant 0 : index
    %c0_32 = arith.constant 0 : index
    %55 = vector.load %arg4[%c1, %c0_31, %c0_32] : memref<9x4x8xbf16, #tpu.memory_space<vmem>>, vector<1x4x8xbf16>
    %56 = vector.shape_cast %55 : vector<1x4x8xbf16> to vector<4x8xbf16>
    %cst_33 = arith.constant dense<0.000000e+00> : vector<4x256xf32>
    %57 = tpu.matmul %56, %54, %cst_33 {dimension_numbers = #tpu.dot_dimension_numbers<[1], [0], [0], [1], [0, 0, 1, 1], [], []>} : vector<4x8xbf16>, vector<8x256xbf16>, vector<4x256xf32> -> vector<4x256xf32>
    %58 = arith.addf %53, %57 : vector<4x256xf32>
    %c0_34 = arith.constant 0 : index
    %c113 = arith.constant 113 : index
    %59 = vector.load %arg6[%c0_34, %c113] : memref<8x512xbf16, #tpu.memory_space<vmem>>, vector<8x256xbf16>
    %cst_35 = arith.constant 0.000000e+00 : bf16
    %60 = vector.broadcast %cst_35 : bf16 to vector<8x256xbf16>
    %61 = vector.shape_cast %43 : vector<1x256xi1> to vector<1x256xi1>
    %62 = vector.broadcast %61 : vector<1x256xi1> to vector<8x256xi1>
    %63 = arith.select %62, %59, %60 : vector<8x256xi1>, vector<8x256xbf16>
    %c2 = arith.constant 2 : index
    %c0_36 = arith.constant 0 : index
    %c0_37 = arith.constant 0 : index
    %64 = vector.load %arg4[%c2, %c0_36, %c0_37] : memref<9x4x8xbf16, #tpu.memory_space<vmem>>, vector<1x4x8xbf16>
    %65 = vector.shape_cast %64 : vector<1x4x8xbf16> to vector<4x8xbf16>
    %cst_38 = arith.constant dense<0.000000e+00> : vector<4x256xf32>
    %66 = tpu.matmul %65, %63, %cst_38 {dimension_numbers = #tpu.dot_dimension_numbers<[1], [0], [0], [1], [0, 0, 1, 1], [], []>} : vector<4x8xbf16>, vector<8x256xbf16>, vector<4x256xf32> -> vector<4x256xf32>
    %67 = arith.addf %58, %66 : vector<4x256xf32>
    %c0_39 = arith.constant 0 : index
    %c127 = arith.constant 127 : index
    %68 = vector.load %arg6[%c0_39, %c127] : memref<8x512xbf16, #tpu.memory_space<vmem>>, vector<8x256xbf16>
    %cst_40 = arith.constant 0.000000e+00 : bf16
    %69 = vector.broadcast %cst_40 : bf16 to vector<8x256xbf16>
    %70 = vector.shape_cast %41 : vector<1x256xi1> to vector<1x256xi1>
    %71 = vector.broadcast %70 : vector<1x256xi1> to vector<8x256xi1>
    %72 = arith.select %71, %68, %69 : vector<8x256xi1>, vector<8x256xbf16>
    %c3 = arith.constant 3 : index
    %c0_41 = arith.constant 0 : index
    %c0_42 = arith.constant 0 : index
    %73 = vector.load %arg4[%c3, %c0_41, %c0_42] : memref<9x4x8xbf16, #tpu.memory_space<vmem>>, vector<1x4x8xbf16>
    %74 = vector.shape_cast %73 : vector<1x4x8xbf16> to vector<4x8xbf16>
    %cst_43 = arith.constant dense<0.000000e+00> : vector<4x256xf32>
    %75 = tpu.matmul %74, %72, %cst_43 {dimension_numbers = #tpu.dot_dimension_numbers<[1], [0], [0], [1], [0, 0, 1, 1], [], []>} : vector<4x8xbf16>, vector<8x256xbf16>, vector<4x256xf32> -> vector<4x256xf32>
    %76 = arith.addf %67, %75 : vector<4x256xf32>
    %c0_44 = arith.constant 0 : index
    %c128_45 = arith.constant 128 : index
    %77 = vector.load %arg6[%c0_44, %c128_45] : memref<8x512xbf16, #tpu.memory_space<vmem>>, vector<8x256xbf16>
    %c4_46 = arith.constant 4 : index
    %c0_47 = arith.constant 0 : index
    %c0_48 = arith.constant 0 : index
    %78 = vector.load %arg4[%c4_46, %c0_47, %c0_48] : memref<9x4x8xbf16, #tpu.memory_space<vmem>>, vector<1x4x8xbf16>
    %79 = vector.shape_cast %78 : vector<1x4x8xbf16> to vector<4x8xbf16>
    %cst_49 = arith.constant dense<0.000000e+00> : vector<4x256xf32>
    %80 = tpu.matmul %79, %77, %cst_49 {dimension_numbers = #tpu.dot_dimension_numbers<[1], [0], [0], [1], [0, 0, 1, 1], [], []>} : vector<4x8xbf16>, vector<8x256xbf16>, vector<4x256xf32> -> vector<4x256xf32>
    %81 = arith.addf %76, %80 : vector<4x256xf32>
    %c0_50 = arith.constant 0 : index
    %c129 = arith.constant 129 : index
    %82 = vector.load %arg6[%c0_50, %c129] : memref<8x512xbf16, #tpu.memory_space<vmem>>, vector<8x256xbf16>
    %cst_51 = arith.constant 0.000000e+00 : bf16
    %83 = vector.broadcast %cst_51 : bf16 to vector<8x256xbf16>
    %84 = vector.shape_cast %43 : vector<1x256xi1> to vector<1x256xi1>
    %85 = vector.broadcast %84 : vector<1x256xi1> to vector<8x256xi1>
    %86 = arith.select %85, %82, %83 : vector<8x256xi1>, vector<8x256xbf16>
    %c5 = arith.constant 5 : index
    %c0_52 = arith.constant 0 : index
    %c0_53 = arith.constant 0 : index
    %87 = vector.load %arg4[%c5, %c0_52, %c0_53] : memref<9x4x8xbf16, #tpu.memory_space<vmem>>, vector<1x4x8xbf16>
    %88 = vector.shape_cast %87 : vector<1x4x8xbf16> to vector<4x8xbf16>
    %cst_54 = arith.constant dense<0.000000e+00> : vector<4x256xf32>
    %89 = tpu.matmul %88, %86, %cst_54 {dimension_numbers = #tpu.dot_dimension_numbers<[1], [0], [0], [1], [0, 0, 1, 1], [], []>} : vector<4x8xbf16>, vector<8x256xbf16>, vector<4x256xf32> -> vector<4x256xf32>
    %90 = arith.addf %81, %89 : vector<4x256xf32>
    %c0_55 = arith.constant 0 : index
    %c143 = arith.constant 143 : index
    %91 = vector.load %arg6[%c0_55, %c143] : memref<8x512xbf16, #tpu.memory_space<vmem>>, vector<8x256xbf16>
    %cst_56 = arith.constant 0.000000e+00 : bf16
    %92 = vector.broadcast %cst_56 : bf16 to vector<8x256xbf16>
    %93 = vector.shape_cast %41 : vector<1x256xi1> to vector<1x256xi1>
    %94 = vector.broadcast %93 : vector<1x256xi1> to vector<8x256xi1>
    %95 = arith.select %94, %91, %92 : vector<8x256xi1>, vector<8x256xbf16>
    %c6 = arith.constant 6 : index
    %c0_57 = arith.constant 0 : index
    %c0_58 = arith.constant 0 : index
    %96 = vector.load %arg4[%c6, %c0_57, %c0_58] : memref<9x4x8xbf16, #tpu.memory_space<vmem>>, vector<1x4x8xbf16>
    %97 = vector.shape_cast %96 : vector<1x4x8xbf16> to vector<4x8xbf16>
    %cst_59 = arith.constant dense<0.000000e+00> : vector<4x256xf32>
    %98 = tpu.matmul %97, %95, %cst_59 {dimension_numbers = #tpu.dot_dimension_numbers<[1], [0], [0], [1], [0, 0, 1, 1], [], []>} : vector<4x8xbf16>, vector<8x256xbf16>, vector<4x256xf32> -> vector<4x256xf32>
    %99 = arith.addf %90, %98 : vector<4x256xf32>
    %c0_60 = arith.constant 0 : index
    %c144 = arith.constant 144 : index
    %100 = vector.load %arg6[%c0_60, %c144] : memref<8x512xbf16, #tpu.memory_space<vmem>>, vector<8x256xbf16>
    %c7 = arith.constant 7 : index
    %c0_61 = arith.constant 0 : index
    %c0_62 = arith.constant 0 : index
    %101 = vector.load %arg4[%c7, %c0_61, %c0_62] : memref<9x4x8xbf16, #tpu.memory_space<vmem>>, vector<1x4x8xbf16>
    %102 = vector.shape_cast %101 : vector<1x4x8xbf16> to vector<4x8xbf16>
    %cst_63 = arith.constant dense<0.000000e+00> : vector<4x256xf32>
    %103 = tpu.matmul %102, %100, %cst_63 {dimension_numbers = #tpu.dot_dimension_numbers<[1], [0], [0], [1], [0, 0, 1, 1], [], []>} : vector<4x8xbf16>, vector<8x256xbf16>, vector<4x256xf32> -> vector<4x256xf32>
    %104 = arith.addf %99, %103 : vector<4x256xf32>
    %c0_64 = arith.constant 0 : index
    %c145 = arith.constant 145 : index
    %105 = vector.load %arg6[%c0_64, %c145] : memref<8x512xbf16, #tpu.memory_space<vmem>>, vector<8x256xbf16>
    %cst_65 = arith.constant 0.000000e+00 : bf16
    %106 = vector.broadcast %cst_65 : bf16 to vector<8x256xbf16>
    %107 = vector.shape_cast %43 : vector<1x256xi1> to vector<1x256xi1>
    %108 = vector.broadcast %107 : vector<1x256xi1> to vector<8x256xi1>
    %109 = arith.select %108, %105, %106 : vector<8x256xi1>, vector<8x256xbf16>
    %c8 = arith.constant 8 : index
    %c0_66 = arith.constant 0 : index
    %c0_67 = arith.constant 0 : index
    %110 = vector.load %arg4[%c8, %c0_66, %c0_67] : memref<9x4x8xbf16, #tpu.memory_space<vmem>>, vector<1x4x8xbf16>
    %111 = vector.shape_cast %110 : vector<1x4x8xbf16> to vector<4x8xbf16>
    %cst_68 = arith.constant dense<0.000000e+00> : vector<4x256xf32>
    %112 = tpu.matmul %111, %109, %cst_68 {dimension_numbers = #tpu.dot_dimension_numbers<[1], [0], [0], [1], [0, 0, 1, 1], [], []>} : vector<4x8xbf16>, vector<8x256xbf16>, vector<4x256xf32> -> vector<4x256xf32>
    %113 = arith.addf %104, %112 : vector<4x256xf32>
    %c0_69 = arith.constant 0 : index
    %c0_70 = arith.constant 0 : index
    %c0_71 = arith.constant 0 : index
    %114 = vector.load %arg5[%c0_69, %c0_70, %c0_71] : memref<1x4x256xf32, #tpu.memory_space<vmem>>, vector<1x4x256xf32>
    %115 = vector.shape_cast %114 : vector<1x4x256xf32> to vector<4x256xf32>
    %116 = vector.shape_cast %113 : vector<4x256xf32> to vector<1x4x256xf32>
    tpu.vector_store %arg5[%c0_69, %c0_70, %c0_71], %116 {strides = array<i32>} : memref<1x4x256xf32, #tpu.memory_space<vmem>>, vector<1x4x256xf32>,
    return
  }
  func.func @transform_0(%arg0: i32) -> (i32, i32, i32) {
    %c0_i32 = arith.constant 0 : i32
    %c0_i32_0 = arith.constant 0 : i32
    %c0_i32_1 = arith.constant 0 : i32
    return %arg0, %c0_i32, %c0_i32_0 : i32, i32, i32
  }
  func.func @transform_1(%arg0: i32) -> (i32, i32, i32) {
    %c0_i32 = arith.constant 0 : i32
    %c0_i32_0 = arith.constant 0 : i32
    %c0_i32_1 = arith.constant 0 : i32
    return %arg0, %c0_i32, %c0_i32_0 : i32, i32, i32
  }
  func.func @transform_2(%arg0: i32) -> (i32, i32) {
    %c0_i32 = arith.constant 0 : i32
    %c0_i32_0 = arith.constant 0 : i32
    %c0_i32_1 = arith.constant 0 : i32
    return %c0_i32, %c0_i32_0 : i32, i32
  }
  func.func @transform_3(%arg0: i32) -> (i32, i32, i32) {
    %c0_i32 = arith.constant 0 : i32
    %c0_i32_0 = arith.constant 0 : i32
    %c0_i32_1 = arith.constant 0 : i32
    %c0_i32_2 = arith.constant 0 : i32
    return %c0_i32, %c0_i32_0, %c0_i32_1 : i32, i32, i32
  }
  func.func @transform_4(%arg0: i32) -> (i32, i32, i32) {
    %c0_i32 = arith.constant 0 : i32
    %c0_i32_0 = arith.constant 0 : i32
    %c0_i32_1 = arith.constant 0 : i32
    return %arg0, %c0_i32, %c0_i32_0 : i32, i32, i32
  }
}

</mosaic_0001>

<bundles_post_ra>
// kernel: tpu_custom_call.1
= control target key start
LH: loop header
LB: loop body
LE: loop exit
PB: predicated region body
PF: predicated region fallthrough
CT: control target
= control target key end

     0   :  { %9 = vsyncpa [#allocation4], 0  ;;  %s1639_s0 = inlined_call_operand.vmem [shape: bf16[2,4,256], index: 0, kind: input, shape index: {}]   ;;  %s1640_s1 = inlined_call_operand.vmem [shape: bf16[2,4,256], index: 1, kind: input, shape index: {}]   ;;  %s1641_s2 = inlined_call_operand.vmem [shape: bf16[8,8], index: 2, kind: input, shape index: {}]   ;;  %s1642_s3 = inlined_call_operand.vmem [shape: bf16[9,4,8], index: 3, kind: input, shape index: {}]   ;;  %s1643_s4 = inlined_call_operand.hbm [shape: f32[2,4,256], index: 4, kind: output, shape index: {}]  }
   0x1   :  { %11 = vsyncpa [#allocation4 + $0x1], 0  ;;  %s1272_s15 = smov 0   ;;  %s1274_s16 = smov 0  }
   0x2   :  { %s1276_s17 = smov 0   ;;  %s1278_s18 = smov 0  }
   0x3 LB: > { %s1293_s19 = sadd.s32 4294967295, %s1235_s18   ;;  %s1077_s20 = sadd.s32 4294967294, %s1235_s18   ;;  %s1235_s18 = sphi %s1278_s18, %s1681_s18   ;;  %s1231_s17 = sphi %s1276_s17, %s1680_s17   ;;  %s1227_s16 = sphi %s1274_s16, %s1679_s16   ;;  %s1223_s15 = sphi %s1272_s15, %s1678_s15  }
   0x4   : > { %s1297_s21 = sadd.s32 1, %s1235_s18   ;;  %s118_s22 = sadd.s32 1, %s1231_s17 }
   0x5   : > { %s115_s23 = ssub.s32 %s1235_s18, %s1297_s21  ;;  %p128_p0 = scmp.ne.s32.totalorder %s1231_s17, %s1227_s16 }
   0x6   : > { %p116_p1 = scmp.eq.s32.totalorder %s115_s23, 0  ;;  %p129_p2 = scmp.eq.s32.totalorder %s1293_s19, 1 }
   0x7   : > { %p134_p3 = scmp.ne.s32.totalorder %s1227_s16, %s1223_s15  ;;  %p135_p4 = scmp.eq.s32.totalorder %s1077_s20, 1 }
   0x8   : > { %s1308_s24 = scalar_select %p116_p1, %s1231_s17, %s118_s22  }
   0x9   : > { %p1310_p5 = por %p129_p2, %p128_p0  ;;  %p1314_p6 = por %p135_p4, %p134_p3 }
   0xa   : > { %p1080_p7 = scmp.ge.s32.totalorder %s1235_s18, 1  ;;  %p175_p8 = scmp.lt.s32.totalorder %s1235_s18, 3 }
   0xc   : > { %p176_p9 = pnand %p1080_p7, %p175_p8 }
   0xd   : > { %p206_p10 = scmp.lt.s32.totalorder (!%p176_p9), %s1293_s19, 1  ;;  %s1237_s5 = smov (!%p176_p9), 124  }
   0xe   : > { %179 = sbr.rel (%p176_p9) target bundleno = 603 (0x25b), region = 36  ;;  %s1239_s14 = smov (!%p176_p9), 111  }
   0xf   : > { %s1240_s20 = smov (!%p176_p9), 113   ;;  %s1241_s22 = smov (!%p176_p9), 1  }
  0x10   : > { %s1242_s23 = smov (!%p176_p9), 17   ;;  %s1243_s27 = smov (!%p176_p9), 127  }
  0x11   : > { %s1244_s28 = smov (!%p176_p9), 15   ;;  %s203_s6 = sand.u32 (!%p176_p9), 1, %s1227_s16  }
  0x12   : > { %s1081_s7 = sshll.u32 (!%p176_p9), %s203_s6, 3 }
  0x13   : > { %v242_v0 = vld [vmem:[%s1641_s2] sm:$0xf]  ;;  %s207_s29 = scalar_select %p206_p10, %s1293_s19, 1  ;;  %vm252_vm0 = vcmask 1041408   ;;  %vm248_vm1 = vcmask 31744   ;;  %v326_v22 = vlaneseq  ;;  %v1238_v27 = vmov 0  }
  0x14   : > { %v244_v1 = vunpack.c.l.b16 %v242_v0  ;;  %v230_v15 = vld [vmem:[%s1641_s2] sm:$0xf]  ;;  %323 = vst [vmem:[#allocation2] sm:$0xf] %v1238_v27  ;;  %vm457_vm8 = vcmask 138240   ;;  %v1352_v39 = vunpack.c.l.b16 %v1238_v27  ;;  %v1354_v40 = vunpack.c.h.b16 %v1238_v27  ;;  %s205_s12 = scalar_lea.vmem [#allocation3], %s1081_s7 }
  0x15   : > { %s1121_s30 = sshll.u32 %s207_s29, 2  ;;  %v327_v23 = vand.u32 127, %v326_v22  ;;  %324 = vst [vmem:[#allocation2 + $0xc] sm:$0xf] %v1238_v27  ;;  %vm368_vm9 = vcmask 908288   ;;  %vm504_vm13 = vcmask 924672  }
  0x16   : > { %v245_v2 = vpack.c.b16 %v244_v1, %v244_v1  ;;  %s210_s8 = scalar_lea.vmem %s1639_s0, %s1121_s30  ;;  %s215_s11 = scalar_lea.vmem %s1640_s1, %s1121_s30 }
  0x17   : > { %v219_v3 = vld [vmem:[%s210_s8] sm:$0xf]  ;;  %v328_v24 = vadd.s32 128, %v327_v23  ;;  %v333_v25 = vand.u32 15, %v327_v23  ;;  %s1245_s29 = smov 16   ;;  %s1246_s30 = smov 112  }
  0x18   : > { %246 = vrot.lane.b32.xlu0 %v245_v2, %s1237_s5  ;;  %v220_v4 = vunpack.c.l.bf16 %v219_v3  ;;  %v231_v5 = vld [vmem:[%s215_s11] sm:$0xf]  ;;  %s1123_s8 = sshll.u32 %s1293_s19, 3  ;;  %s1003_s13 = sshll.u32 %s205_s12, 4  ;;  %s1004_s13 = int_to_ptr.vmem [resolvable:$true] %s1003_s13 }
  0x19   : > { %v232_v7 = vunpack.c.l.bf16 %v231_v5  ;;  %v340_v26 = vand.u32 15, %v328_v24  ;;  %vm353_vm2 = vcmp.ge.s32.totalorder %v333_v25, 1  ;;  %vm355_vm4 = vcmp.lt.s32.totalorder %v333_v25, 15  ;;  %s1001_s11 = scalar_lea.hbm %s1643_s4, %s1123_s8  ;;  %s990_s19 = scalar_lea.sflag [#allocation4], %s203_s6 }
  0x1a   : > { %v221_v6 = vmax.f32 %v220_v4, 0.0 }
  0x1b   : > { %v233_v8 = vmax.f32 %v232_v7, 0.0  ;;  %vm354_vm3 = vcmp.ge.s32.totalorder %v340_v26, 1  ;;  %vm356_vm5 = vcmp.lt.s32.totalorder %v340_v26, 15 }
  0x1c   : > { %223 = vst [vmem:[#allocation1] ss:$2 sm:$0xff] %v221_v6  ;;  %vm363_vm6 = vmpackc.low %vm354_vm3, %vm353_vm2 }
  0x1d   : > { %vm499_vm7 = vmpackc.low %vm356_vm5, %vm355_vm4  ;;  %v364_v28 = vsel %vm363_vm6, 65537, %v1238_v27  ;;  %vm581_vm4 = vcmask 1039360  }
  0x1e   : > { %v500_v29 = vsel %vm499_vm7, 65537, %v1238_v27 }
  0x1f   : > { %501 = vrot.lane.b32.xlu1 %v500_v29, %s1240_s20  ;;  %702 = vrot.lane.b32.xlu2 %v500_v29, %s1241_s22 }
  0x20   : > { %365 = vrot.lane.b32.xlu0 %v364_v28, %s1239_s14 }
  0x23   : > { %v224_v9 = vld.sshfl [vmem:[#allocation1] sm:$0xff pattern:$0x75316420]  ;;  %v225_v10 = vld.sshfl [vmem:[#allocation1 + $0x8] sm:$0xff pattern:$0x75316420] }
  0x24   : > { %v228_v11 = vpack.c.bf16 %v224_v9, %v224_v9  ;;  %v229_v12 = vpack.c.bf16 %v225_v10, %v225_v10  ;;  %235 = vst [vmem:[#allocation1] ss:$2 sm:$0xff] %v233_v8 }
  0x26   : > { %v289_v13 = vsel %vm252_vm0, %v228_v11, 0  ;;  %v292_v14 = vsel %vm252_vm0, %v229_v12, 0 }
  0x27   : > { %301 = vmatpush.bf16.msra.mxu2 %v289_v13  ;;  %314 = vmatpush.bf16.msra.mxu3 %v292_v14 }
  0x28   : > { %908 = vrot.lane.b32.xlu0 %v500_v29, %s1242_s23  ;;  %578 = vrot.lane.b32.xlu1 %v364_v28, %s1243_s27 }
  0x29   : > { %777 = vrot.lane.b32.xlu2 %v364_v28, %s1244_s28 }
  0x2a   : > { %1088 = vmatmul.msk.bf16.vlgmr.msra.gmra.mxu2 %vm248_vm1, %v230_v15  ;;  %1089 = vmatmul.msk.bf16.vlgmr.msra.gmra.mxu3 %vm248_vm1, %v230_v15 }
  0x2b   : > { %v236_v16 = vld.sshfl [vmem:[#allocation1] sm:$0xff pattern:$0x75316420]  ;;  %v237_v17 = vld.sshfl [vmem:[#allocation1 + $0x8] sm:$0xff pattern:$0x75316420] }
  0x2c   : > { %v240_v18 = vpack.c.bf16 %v236_v16, %v236_v16  ;;  %v241_v19 = vpack.c.bf16 %v237_v17, %v237_v17 }
  0x2e   : > { %v254_v20 = vsel %vm252_vm0, %v240_v18, 0  ;;  %v257_v21 = vsel %vm252_vm0, %v241_v19, 0 }
  0x2f   : > { %266 = vmatpush.bf16.msra.mxu0 %v254_v20  ;;  %279 = vmatpush.bf16.msra.mxu1 %v257_v21 }
  0x79   : > { %v703_v18 = vpop.permute.xlu2 %702 }
  0x8a   : > { %v247_v30 = vpop.permute.xlu0 %246 }
  0x8b   : > { %1086 = vmatmul.msk.bf16.vlgmr.msra.gmra.mxu0 %vm248_vm1, %v247_v30  ;;  %1087 = vmatmul.msk.bf16.vlgmr.msra.gmra.mxu1 %vm248_vm1, %v247_v30 }
  0x91   : > { %v502_v48 = vpop.permute.xlu1 %501 }
  0x92   : > { %v366_v35 = vpop.permute.xlu0 %365  ;;  %v503_v59 = vrot.slane %v502_v48, 4 }
  0x93   : > { %v367_v43 = vrot.slane %v366_v35, 4 }
  0x94   : > { %v505_v1 = vsel %vm504_vm13, %v503_v59, %v502_v48  ;;  %v513_v5 = vunpack.c.l.b16 %v503_v59  ;;  %v514_v11 = vunpack.c.h.b16 %v503_v59 }
  0x95   : > { %v369_v51 = vsel %vm368_vm9, %v367_v43, %v366_v35  ;;  %v377_v55 = vunpack.c.l.b16 %v367_v43  ;;  %v378_v56 = vunpack.c.h.b16 %v367_v43  ;;  %v506_v9 = vunpack.c.l.b16 %v505_v1 }
  0x96   : > { %v370_v53 = vunpack.c.l.b16 %v369_v51  ;;  %v371_v54 = vunpack.c.h.b16 %v369_v51  ;;  %v507_v10 = vunpack.c.h.b16 %v505_v1  ;;  %vm1420_vm7 = vcmp.ne.s32.totalorder %v513_v5, %v1352_v39 }
  0x97   : > { %vm1376_vm0 = vcmp.ne.s32.totalorder %v377_v55, %v1352_v39  ;;  %vm1381_vm1 = vcmp.ne.s32.totalorder %v378_v56, %v1354_v40  ;;  %vm1409_vm5 = vcmp.ne.s32.totalorder %v506_v9, %v1352_v39 }
  0x98   : > { %vm1366_vm14 = vcmp.ne.s32.totalorder %v370_v53, %v1352_v39  ;;  %vm1371_vm15 = vcmp.ne.s32.totalorder %v371_v54, %v1354_v40  ;;  %vm383_vm3 = vmpackc.low %vm1381_vm1, %vm1376_vm0  ;;  %vm1414_vm6 = vcmp.ne.s32.totalorder %v507_v10, %v1354_v40 }
  0x99   : > { %vm376_vm2 = vmpackc.low %vm1371_vm15, %vm1366_vm14  ;;  %vm615_vm14 = vcmask 7168  }
  0x9a   : > { %v909_v36 = vpop.permute.xlu0 %908  ;;  %v579_v2 = vpop.permute.xlu1 %578 }
  0x9b   : > { %v1348_v37 = vrot.slane %v909_v36, 4  ;;  %v580_v12 = vrot.slane %v579_v2, 4 }
  0x9d   : > { %v911_v38 = vsel %vm457_vm8, %v1348_v37, %v909_v36  ;;  %v582_v21 = vsel %vm581_vm4, %v580_v12, %v579_v2  ;;  %v590_v29 = vunpack.c.l.b16 %v580_v12  ;;  %v591_v30 = vunpack.c.h.b16 %v580_v12 }
  0x9e   : > { %v912_v41 = vunpack.c.l.b16 %v911_v38  ;;  %v913_v42 = vunpack.c.h.b16 %v911_v38  ;;  %v583_v27 = vunpack.c.l.b16 %v582_v21  ;;  %v584_v28 = vunpack.c.h.b16 %v582_v21 }
  0x9f   : > { %vm1453_vm1 = vcmp.ne.s32.totalorder %v590_v29, %v1352_v39 }
  0xa0   : > { %vm916_vm10 = vcmp.ne.s32.totalorder %v912_v41, %v1352_v39  ;;  %vm917_vm11 = vcmp.ne.s32.totalorder %v913_v42, %v1354_v40  ;;  %vm1439_vm15 = vcmp.ne.s32.totalorder %v583_v27, %v1352_v39  ;;  %vm1444_vm0 = vcmp.ne.s32.totalorder %v584_v28, %v1354_v40 }
  0xa1   : > { %vm918_vm12 = vmpackc.low %vm917_vm11, %vm916_vm10  ;;  %vm1425_vm10 = vcmp.ne.s32.totalorder %v514_v11, %v1354_v40  ;;  %v920_v27 = vunpack.c.h.b16 %v1348_v37 }
  0xa2   : > { %vm512_vm11 = vmpackc.low %vm1414_vm6, %vm1409_vm5  ;;  %vm538_vm6 = vcmask 121856  }
  0xad   : > { %v303_v31 = vpop.f32.mrf.mxu2  ;;  %v316_v32 = vpop.f32.mrf.mxu3 }
  0xb5   : > { %v305_v33 = vpop.f32.mrf.mxu2  ;;  %v318_v34 = vpop.f32.mrf.mxu3 }
 0x108   : > { %v268_v44 = vpop.f32.mrf.mxu0  ;;  %v281_v45 = vpop.f32.mrf.mxu1 }
 0x109   : > { %v304_v46 = vadd.f32 %v303_v31, %v268_v44  ;;  %v317_v47 = vadd.f32 %v316_v32, %v281_v45  ;;  %v704_v31 = vrot.slane %v703_v18, 4  ;;  %v778_v45 = vpop.permute.xlu2 %777 }
 0x10a   : > { %v779_v54 = vrot.slane %v778_v45, 4 }
 0x10b   : > { %v320_v49 = vmax.f32 %v304_v46, 0.0  ;;  %v321_v50 = vmax.f32 %v317_v47, 0.0  ;;  %v705_v44 = vsel %vm615_vm14, %v704_v31, %v703_v18  ;;  %v713_v48 = vunpack.c.l.b16 %v704_v31 }
 0x10c   : > { %v706_v51 = vunpack.c.l.b16 %v705_v44  ;;  %v707_v53 = vunpack.c.h.b16 %v705_v44  ;;  %v780_v1 = vsel %vm538_vm6, %v779_v54, %v778_v45 }
 0x10d   : > { %v1359_v52 = vpack.c.bf16 %v321_v50, %v320_v49  ;;  %v714_v49 = vunpack.c.h.b16 %v704_v31  ;;  %v782_v9 = vunpack.c.h.b16 %v780_v1 }
 0x10f   : > { %325 = vst [vmem:[#allocation2 + $0x4] sm:$0xff] %v1359_v52  ;;  %v1363_v60 = vsel %vm918_vm12, %v1359_v52, 0  ;;  %vm519_vm12 = vmpackc.low %vm1425_vm10, %vm1420_vm7  ;;  %vm1474_vm7 = vcmp.ne.s32.totalorder %v713_v48, %v1352_v39  ;;  %vm1479_vm10 = vcmp.ne.s32.totalorder %v714_v49, %v1354_v40 }
 0x110   : > { %v270_v57 = vpop.f32.mrf.mxu0  ;;  %v283_v58 = vpop.f32.mrf.mxu1 }
 0x116   : > { %v1390_v3 = vld [vmem:[#allocation2 + $0x8] sm:$0xf]  ;;  %v1392_v4 = vld [vmem:[#allocation2] sm:$0xff] }
 0x117   : > { %v393_v6 = vunpack.c.l.b16 %v1390_v3  ;;  %v392_v7 = vunpack.c.h.b16 %v1392_v4  ;;  %v391_v8 = vunpack.c.l.b16 %v1392_v4  ;;  %v385_v16 = vsel %vm383_vm3, %v1390_v3, 0  ;;  %vm589_vm3 = vmpackc.low %vm1444_vm0, %vm1439_vm15 }
 0x118   : > { %v384_v17 = vsel %vm376_vm2, %v1392_v4, 0  ;;  %v447_v22 = vunpack.c.l.b16 %v385_v16  ;;  %v520_v35 = vsel %vm512_vm11, %v1392_v4, 0  ;;  %v521_v41 = vsel %vm519_vm12, %v1390_v3, 0  ;;  %vm719_vm15 = vmpackc.low %vm1479_vm10, %vm1474_vm7 }
 0x119   : > { %v396_v13 = vpack.c.b16 %v393_v6, %v393_v6  ;;  %v395_v14 = vpack.c.b16 %v392_v7, %v392_v7  ;;  %v394_v15 = vpack.c.b16 %v391_v8, %v391_v8  ;;  %v445_v23 = vunpack.c.l.b16 %v384_v17 }
 0x11a   : > { %v446_v26 = vunpack.c.h.b16 %v384_v17  ;;  %v450_v32 = vpack.c.b16 %v447_v22, %v447_v22  ;;  %vm1458_vm2 = vcmp.ne.s32.totalorder %v591_v30, %v1354_v40  ;;  %v526_v46 = vunpack.c.l.b16 %v520_v35 }
 0x11b   : > { %401 = vrot.lane.b32.xlu2 %v396_v13, %s1245_s29  ;;  %399 = vrot.lane.b32.xlu1 %v395_v14, %s1245_s29  ;;  %v448_v33 = vpack.c.b16 %v445_v23, %v445_v23  ;;  %v527_v47 = vunpack.c.h.b16 %v520_v35  ;;  %v528_v50 = vunpack.c.l.b16 %v521_v41  ;;  %vm596_vm5 = vmpackc.low %vm1458_vm2, %vm1453_vm1  ;;  %v597_v57 = vsel %vm589_vm3, %v1392_v4, 0  ;;  %v701_v4 = vld [vmem:[#allocation2 + $0xc] sm:$0xf] }
 0x11c   : > { %397 = vrot.lane.b32.xlu0 %v394_v15, %s1245_s29  ;;  %v449_v34 = vpack.c.b16 %v446_v26, %v446_v26  ;;  %v529_v55 = vpack.c.b16 %v526_v46, %v526_v46  ;;  %v598_v59 = vsel %vm596_vm5, %v1390_v3, 0  ;;  %vm1486_vm11 = vcmp.ne.s32.totalorder %v706_v51, %v1352_v39 }
 0x11d   : > { %v530_v56 = vpack.c.b16 %v527_v47, %v527_v47  ;;  %v531_v58 = vpack.c.b16 %v528_v50, %v528_v50  ;;  %vm1491_vm12 = vcmp.ne.s32.totalorder %v707_v53, %v1354_v40  ;;  %v604_v2 = vunpack.c.h.b16 %v597_v57  ;;  %v1090_v50 = vld [vmem:[%s1642_s3 + $0x2] sm:$0x3] }
 0x11e   : > { %v605_v3 = vunpack.c.l.b16 %v598_v59  ;;  %v603_v5 = vunpack.c.l.b16 %v597_v57  ;;  %vm712_vm0 = vmpackc.low %vm1491_vm12, %vm1486_vm11  ;;  %v788_v6 = vunpack.c.l.b16 %v779_v54  ;;  %v789_v7 = vunpack.c.h.b16 %v779_v54  ;;  %v386_v59 = vld [vmem:[%s1642_s3] sm:$0x3] }
 0x11f   : > { %v781_v8 = vunpack.c.l.b16 %v780_v1  ;;  %v721_v10 = vsel %vm719_vm15, %v701_v4, 0  ;;  %v607_v11 = vpack.c.b16 %v604_v2, %v604_v2  ;;  %v720_v14 = vsel %vm712_vm0, %v1359_v52, 0 }
 0x120   : > { %v608_v12 = vpack.c.b16 %v605_v3, %v605_v3  ;;  %v606_v13 = vpack.c.b16 %v603_v5, %v603_v5  ;;  %v728_v15 = vunpack.c.l.b16 %v721_v10  ;;  %vm792_vm1 = vcmp.ne.s32.totalorder %v788_v6, %v1352_v39  ;;  %v1095_v6 = vld [vmem:[%s1642_s3 + $0x4] sm:$0x3] }
 0x121   : > { %vm793_vm2 = vcmp.ne.s32.totalorder %v789_v7, %v1354_v40  ;;  %vm785_vm3 = vcmp.ne.s32.totalorder %v781_v8, %v1352_v39  ;;  %vm786_vm5 = vcmp.ne.s32.totalorder %v782_v9, %v1354_v40  ;;  %v727_v16 = vunpack.c.h.b16 %v720_v14 }
 0x122   : > { %v726_v17 = vunpack.c.l.b16 %v720_v14  ;;  %vm794_vm7 = vmpackc.low %vm793_vm2, %vm792_vm1  ;;  %v731_v18 = vpack.c.b16 %v728_v15, %v728_v15  ;;  %v919_v26 = vunpack.c.l.b16 %v1348_v37  ;;  %v858_v31 = vunpack.c.l.b16 %v701_v4  ;;  %v1098_v14 = vld [vmem:[%s1642_s3 + $0x6] sm:$0x3] }
 0x123   : > { %455 = vrot.lane.b32.xlu1 %v450_v32, %s1242_s23  ;;  %451 = vrot.lane.b32.xlu2 %v448_v33, %s1242_s23  ;;  %vm787_vm10 = vmpackc.low %vm786_vm5, %vm785_vm3  ;;  %v730_v19 = vpack.c.b16 %v727_v16, %v727_v16  ;;  %v796_v20 = vsel %vm794_vm7, %v701_v4, 0  ;;  %vm924_vm12 = vcmp.ne.s32.totalorder %v920_v27, %v1354_v40  ;;  %v857_v32 = vunpack.c.h.b16 %v1359_v52 }
 0x124   : > { %453 = vrot.lane.b32.xlu0 %v449_v34, %s1242_s23  ;;  %v729_v21 = vpack.c.b16 %v726_v17, %v726_v17  ;;  %v795_v22 = vsel %vm787_vm10, %v1359_v52, 0  ;;  %v803_v23 = vunpack.c.l.b16 %v796_v20  ;;  %vm923_vm11 = vcmp.ne.s32.totalorder %v919_v26, %v1352_v39 }
 0x125   : > { %v801_v24 = vunpack.c.l.b16 %v795_v22  ;;  %v802_v25 = vunpack.c.h.b16 %v795_v22  ;;  %v856_v33 = vunpack.c.l.b16 %v1359_v52  ;;  %vm925_vm15 = vmpackc.low %vm924_vm12, %vm923_vm11  ;;  %v861_v37 = vpack.c.b16 %v858_v31, %v858_v31  ;;  %v1101_v22 = vld [vmem:[%s1642_s3 + $0x8] sm:$0x3] }
 0x126   : > { %v806_v28 = vpack.c.b16 %v803_v23, %v803_v23  ;;  %v860_v34 = vpack.c.b16 %v857_v32, %v857_v32  ;;  %v927_v35 = vsel %vm925_vm15, %v701_v4, 0  ;;  %v932_v39 = vunpack.c.l.b16 %v1363_v60 }
 0x127   : > { %v804_v29 = vpack.c.b16 %v801_v24, %v801_v24  ;;  %v805_v30 = vpack.c.b16 %v802_v25, %v802_v25  ;;  %v859_v36 = vpack.c.b16 %v856_v33, %v856_v33  ;;  %v934_v38 = vunpack.c.l.b16 %v927_v35 }
 0x128   : > { %v933_v40 = vunpack.c.h.b16 %v1363_v60  ;;  %v935_v42 = vpack.c.b16 %v932_v39, %v932_v39  ;;  %vm403_vm0 = vcmask 130048   ;;  %vm410_vm1 = vcmask 1043456  }
 0x129   : > { %v937_v41 = vpack.c.b16 %v934_v38, %v934_v38  ;;  %vm406_vm2 = vcmask 64512   ;;  %v667_v4 = vsel %vm410_vm1, %v859_v36, 0  ;;  %v670_v5 = vsel %vm410_vm1, %v860_v34, 0 }
 0x12a   : > { %v936_v43 = vpack.c.b16 %v933_v40, %v933_v40 }
 0x12b   : > { %532 = vrot.lane.b32.xlu1 %v529_v55, %s1244_s28  ;;  %534 = vrot.lane.b32.xlu2 %v530_v56, %s1244_s28 }
 0x12c   : > { %536 = vrot.lane.b32.xlu0 %v531_v58, %s1244_s28  ;;  %s1193_s28 = scalar_lea.hbm %s1643_s4, 16 }
 0x133   : > { %611 = vrot.lane.b32.xlu1 %v607_v11, %s1241_s22  ;;  %613 = vrot.lane.b32.xlu2 %v608_v12, %s1241_s22 }
 0x134   : > { %609 = vrot.lane.b32.xlu0 %v606_v13, %s1241_s22 }
 0x13b   : > { %734 = vrot.lane.b32.xlu1 %v730_v19, %s1243_s27  ;;  %736 = vrot.lane.b32.xlu2 %v731_v18, %s1243_s27 }
 0x13c   : > { %732 = vrot.lane.b32.xlu0 %v729_v21, %s1243_s27 }
 0x143   : > { %807 = vrot.lane.b32.xlu1 %v804_v29, %s1240_s20  ;;  %809 = vrot.lane.b32.xlu2 %v805_v30, %s1240_s20  ;;  %v1104_v29 = vld [vmem:[%s1642_s3 + $0xa] sm:$0x3] }
 0x144   : > { %811 = vrot.lane.b32.xlu0 %v806_v28, %s1240_s20 }
 0x14b   : > { %864 = vrot.lane.b32.xlu1 %v860_v34, %s1246_s30  ;;  %866 = vrot.lane.b32.xlu2 %v861_v37, %s1246_s30 }
 0x14c   : > { %862 = vrot.lane.b32.xlu0 %v859_v36, %s1246_s30  ;;  %v1107_v36 = vld [vmem:[%s1642_s3 + $0xc] sm:$0x3] }
 0x153   : > { %938 = vrot.lane.b32.xlu1 %v935_v42, %s1239_s14  ;;  %940 = vrot.lane.b32.xlu2 %v936_v43, %s1239_s14 }
 0x154   : > { %942 = vrot.lane.b32.xlu0 %v937_v41, %s1239_s14  ;;  %s1005_s14 = sshll.u32 %s1001_s11, 4  ;;  %s1006_s14 = int_to_ptr.hbm [resolvable:$true] %s1005_s14 }
 0x155   : > { %s1187_s20 = sshra.s32 %s1006_s14, 4  ;;  %s1188_s20 = int_to_ptr.hbm [resolvable:$true] %s1187_s20 }
 0x156   : > { %s1189_s22 = scalar_lea.hbm %s1188_s20, 8  ;;  %p1194_p0 = scmp.lt.s32.totalorder %s1188_s20, %s1643_s4 }
 0x157   : > { %p1190_p11 = scmp.ne.s32.totalorder %s1188_s20, %s1189_s22  ;;  %p1195_p1 = scmp.lt.s32.totalorder %s1193_s28, %s1189_s22 }
 0x159   : > { %p1191_p12 = pnand %p1190_p11, %p1310_p5  ;;  %p1196_p2 = por %p1195_p1, %p1194_p0 }
 0x15b   : > { %p1192_p13 = pneg %p1191_p12 }
 0x15d   : > { %p1197_p3 = pnand %p1196_p2, %p1192_p13 }
 0x175   : > { %v402_v52 = vpop.permute.xlu2 %401 }
 0x17d   : > { %v452_v44 = vpop.permute.xlu2 %451 }
 0x185   : > { %v535_v51 = vpop.permute.xlu2 %534 }
 0x18d   : > { %v400_v45 = vpop.permute.xlu1 %399  ;;  %v614_v61 = vpop.permute.xlu2 %613 }
 0x18e   : > { %v398_v46 = vpop.permute.xlu0 %397  ;;  %v405_v47 = vsel %vm403_vm0, %v400_v45, %v402_v52 }
 0x18f   : > { %v404_v48 = vsel %vm403_vm0, %v398_v46, %v400_v45  ;;  %v415_v49 = vsel %vm410_vm1, %v405_v47, 0  ;;  %v1113_v45 = vld [vmem:[%s1642_s3 + $0x10] sm:$0x3] }
 0x190   : > { %v412_v60 = vsel %vm410_vm1, %v404_v48, 0  ;;  %437 = vmatpush.bf16.msrb.mxu1 %v415_v49 }
 0x191   : > { %424 = vmatpush.bf16.msrb.mxu0 %v412_v60 }
 0x193   : > { %1092 = vmatmul.msk.bf16.vlgmr.msrb.gmra.mxu1 %vm406_vm2, %v1090_v50 }
 0x194   : > { %1091 = vmatmul.msk.bf16.vlgmr.msrb.gmra.mxu0 %vm406_vm2, %v1090_v50 }
 0x195   : > { %v456_v53 = vpop.permute.xlu1 %455  ;;  %v737_v10 = vpop.permute.xlu2 %736 }
 0x196   : > { %v454_v54 = vpop.permute.xlu0 %453 }
 0x197   : > { %v458_v55 = vsel %vm457_vm8, %v452_v44, %v454_v54  ;;  %v459_v56 = vsel %vm457_vm8, %v454_v54, %v456_v53  ;;  %vm868_vm8 = vcmask 916480   ;;  %v1110_v44 = vld [vmem:[%s1642_s3 + $0xe] sm:$0x3] }
 0x198   : > { %v464_v57 = vsel %vm410_vm1, %v458_v55, 0  ;;  %v467_v58 = vsel %vm410_vm1, %v459_v56, 0 }
 0x199   : > { %476 = vmatpush.bf16.msrb.mxu2 %v464_v57  ;;  %489 = vmatpush.bf16.msrb.mxu3 %v467_v58 }
 0x19c   : > { %1093 = vmatmul.msk.bf16.vlgmr.msrb.gmra.mxu2 %vm406_vm2, %v386_v59  ;;  %1094 = vmatmul.msk.bf16.vlgmr.msrb.gmra.mxu3 %vm406_vm2, %v386_v59 }
 0x19d   : > { %v533_v62 = vpop.permute.xlu1 %532  ;;  %v810_v21 = vpop.permute.xlu2 %809 }
 0x19e   : > { %v539_v63 = vsel %vm538_vm6, %v533_v62, %v535_v51  ;;  %v537_v0 = vpop.permute.xlu0 %536 }
 0x19f   : > { %v545_v1 = vsel %vm410_vm1, %v539_v63, 0  ;;  %v540_v2 = vsel %vm538_vm6, %v535_v51, %v537_v0 }
 0x1a0   : > { %v548_v3 = vsel %vm410_vm1, %v540_v2, 0  ;;  %557 = vmatpush.bf16.msra.mxu0 %v545_v1 }
 0x1a1   : > { %570 = vmatpush.bf16.msra.mxu1 %v548_v3 }
 0x1a4   : > { %679 = vmatpush.bf16.msrb.mxu0 %v667_v4  ;;  %1097 = vmatmul.msk.bf16.vlgmr.msra.gmra.mxu1 %vm406_vm2, %v1095_v6 }
 0x1a5   : > { %692 = vmatpush.bf16.msrb.mxu1 %v670_v5  ;;  %1096 = vmatmul.msk.bf16.vlgmr.msra.gmra.mxu0 %vm406_vm2, %v1095_v6  ;;  %v612_v7 = vpop.permute.xlu1 %611  ;;  %v867_v30 = vpop.permute.xlu2 %866 }
 0x1a6   : > { %v617_v8 = vsel %vm615_vm14, %v612_v7, %v614_v61  ;;  %v610_v9 = vpop.permute.xlu0 %609 }
 0x1a7   : > { %v625_v11 = vsel %vm410_vm1, %v617_v8, 0  ;;  %v616_v12 = vsel %vm615_vm14, %v610_v9, %v612_v7 }
 0x1a8   : > { %v622_v13 = vsel %vm410_vm1, %v616_v12, 0  ;;  %647 = vmatpush.bf16.msra.mxu3 %v625_v11 }
 0x1a9   : > { %634 = vmatpush.bf16.msra.mxu2 %v622_v13 }
 0x1ac   : > { %1099 = vmatmul.msk.bf16.vlgmr.msra.gmra.mxu2 %vm406_vm2, %v1098_v14  ;;  %1100 = vmatmul.msk.bf16.vlgmr.msra.gmra.mxu3 %vm406_vm2, %v1098_v14 }
 0x1ad   : > { %v735_v15 = vpop.permute.xlu1 %734  ;;  %v941_v38 = vpop.permute.xlu2 %940 }
 0x1ae   : > { %v739_v16 = vsel %vm581_vm4, %v735_v15, %v737_v10  ;;  %v733_v17 = vpop.permute.xlu0 %732 }
 0x1af   : > { %v747_v18 = vsel %vm410_vm1, %v739_v16, 0  ;;  %v738_v19 = vsel %vm581_vm4, %v733_v17, %v735_v15 }
 0x1b0   : > { %v744_v20 = vsel %vm410_vm1, %v738_v19, 0  ;;  %769 = vmatpush.bf16.msrb.mxu3 %v747_v18 }
 0x1b1   : > { %756 = vmatpush.bf16.msrb.mxu2 %v744_v20 }
 0x1b4   : > { %1103 = vmatmul.msk.bf16.vlgmr.msrb.gmra.mxu1 %vm406_vm2, %v1101_v22 }
 0x1b5   : > { %1102 = vmatmul.msk.bf16.vlgmr.msrb.gmra.mxu0 %vm406_vm2, %v1101_v22  ;;  %v808_v23 = vpop.permute.xlu1 %807 }
 0x1b6   : > { %v813_v24 = vsel %vm504_vm13, %v808_v23, %v810_v21  ;;  %v812_v25 = vpop.permute.xlu0 %811 }
 0x1b7   : > { %v819_v26 = vsel %vm410_vm1, %v813_v24, 0  ;;  %v814_v27 = vsel %vm504_vm13, %v810_v21, %v812_v25 }
 0x1b8   : > { %v822_v28 = vsel %vm410_vm1, %v814_v27, 0  ;;  %831 = vmatpush.bf16.msra.mxu0 %v819_v26 }
 0x1b9   : > { %844 = vmatpush.bf16.msra.mxu1 %v822_v28 }
 0x1bc   : > { %1105 = vmatmul.msk.bf16.vlgmr.msrb.gmra.mxu2 %vm406_vm2, %v1104_v29  ;;  %1106 = vmatmul.msk.bf16.vlgmr.msrb.gmra.mxu3 %vm406_vm2, %v1104_v29 }
 0x1bd   : > { %v865_v31 = vpop.permute.xlu1 %864 }
 0x1be   : > { %v870_v32 = vsel %vm868_vm8, %v865_v31, %v867_v30  ;;  %v863_v33 = vpop.permute.xlu0 %862 }
 0x1bf   : > { %v878_v37 = vsel %vm410_vm1, %v870_v32, 0  ;;  %v869_v34 = vsel %vm868_vm8, %v863_v33, %v865_v31 }
 0x1c0   : > { %v875_v35 = vsel %vm410_vm1, %v869_v34, 0  ;;  %900 = vmatpush.bf16.msra.mxu3 %v878_v37 }
 0x1c1   : > { %887 = vmatpush.bf16.msra.mxu2 %v875_v35 }
 0x1c4   : > { %1109 = vmatmul.msk.bf16.vlgmr.msra.gmra.mxu1 %vm406_vm2, %v1107_v36 }
 0x1c5   : > { %1108 = vmatmul.msk.bf16.vlgmr.msra.gmra.mxu0 %vm406_vm2, %v1107_v36  ;;  %v939_v39 = vpop.permute.xlu1 %938 }
 0x1c6   : > { %v944_v40 = vsel %vm368_vm9, %v939_v39, %v941_v38  ;;  %v943_v41 = vpop.permute.xlu0 %942 }
 0x1c7   : > { %v950_v42 = vsel %vm410_vm1, %v944_v40, 0  ;;  %v945_v43 = vsel %vm368_vm9, %v941_v38, %v943_v41 }
 0x1c8   : > { %v953_v52 = vsel %vm410_vm1, %v945_v43, 0  ;;  %962 = vmatpush.bf16.msrb.mxu0 %v950_v42 }
 0x1c9   : > { %975 = vmatpush.bf16.msrb.mxu1 %v953_v52 }
 0x1cc   : > { %1111 = vmatmul.msk.bf16.vlgmr.msra.gmra.mxu2 %vm406_vm2, %v1110_v44  ;;  %1112 = vmatmul.msk.bf16.vlgmr.msra.gmra.mxu3 %vm406_vm2, %v1110_v44 }
 0x1d4   : > { %1115 = vmatmul.msk.bf16.vlgmr.msrb.gmra.mxu1 %vm406_vm2, %v1113_v45 }
 0x1d5   : > { %1114 = vmatmul.msk.bf16.vlgmr.msrb.gmra.mxu0 %vm406_vm2, %v1113_v45 }
 0x210   : > { %v439_v46 = vpop.f32.mrf.mxu1 }
 0x211   : > { %v426_v47 = vpop.f32.mrf.mxu0 }
 0x218   : > { %v441_v48 = vpop.f32.mrf.mxu1 }
 0x219   : > { %v428_v49 = vpop.f32.mrf.mxu0 }
 0x21f   : > { %v478_v60 = vpop.f32.mrf.mxu2  ;;  %v491_v50 = vpop.f32.mrf.mxu3 }
 0x220   : > { %v479_v3 = vadd.f32 %v478_v60, %v426_v47  ;;  %v492_v4 = vadd.f32 %v491_v50, %v439_v46 }
 0x221   : > { %v572_v53 = vpop.f32.mrf.mxu1 }
 0x222   : > { %v559_v51 = vpop.f32.mrf.mxu0  ;;  %v577_v10 = vadd.f32 %v572_v53, %v492_v4 }
 0x223   : > { %v576_v9 = vadd.f32 %v559_v51, %v479_v3 }
 0x227   : > { %v480_v54 = vpop.f32.mrf.mxu2  ;;  %v493_v55 = vpop.f32.mrf.mxu3 }
 0x229   : > { %v574_v57 = vpop.f32.mrf.mxu1 }
 0x22a   : > { %v561_v56 = vpop.f32.mrf.mxu0 }
 0x22f   : > { %v636_v58 = vpop.f32.mrf.mxu2  ;;  %v649_v59 = vpop.f32.mrf.mxu3 }
 0x230   : > { %v653_v11 = vadd.f32 %v636_v58, %v576_v9  ;;  %v654_v12 = vadd.f32 %v649_v59, %v577_v10 }
 0x231   : > { %v694_v62 = vpop.f32.mrf.mxu1 }
 0x232   : > { %v681_v61 = vpop.f32.mrf.mxu0  ;;  %v699_v16 = vadd.f32 %v694_v62, %v654_v12 }
 0x233   : > { %v698_v15 = vadd.f32 %v681_v61, %v653_v11 }
 0x237   : > { %v638_v63 = vpop.f32.mrf.mxu2  ;;  %v651_v0 = vpop.f32.mrf.mxu3 }
 0x239   : > { %v696_v2 = vpop.f32.mrf.mxu1 }
 0x23a   : > { %v683_v1 = vpop.f32.mrf.mxu0 }
 0x23f   : > { %v758_v5 = vpop.f32.mrf.mxu2  ;;  %v771_v6 = vpop.f32.mrf.mxu3 }
 0x240   : > { %v775_v19 = vadd.f32 %v758_v5, %v698_v15  ;;  %v776_v20 = vadd.f32 %v771_v6, %v699_v16 }
 0x241   : > { %v846_v8 = vpop.f32.mrf.mxu1 }
 0x242   : > { %v833_v7 = vpop.f32.mrf.mxu0  ;;  %v851_v22 = vadd.f32 %v846_v8, %v776_v20 }
 0x243   : > { %v850_v21 = vadd.f32 %v833_v7, %v775_v19 }
 0x247   : > { %v760_v13 = vpop.f32.mrf.mxu2  ;;  %v773_v14 = vpop.f32.mrf.mxu3 }
 0x249   : > { %v848_v18 = vpop.f32.mrf.mxu1 }
 0x24a   : > { %v835_v17 = vpop.f32.mrf.mxu0 }
 0x24f   : > { %v889_v23 = vpop.f32.mrf.mxu2  ;;  %v902_v24 = vpop.f32.mrf.mxu3 }
 0x250   : > { %v906_v25 = vadd.f32 %v889_v23, %v850_v21  ;;  %v907_v26 = vadd.f32 %v902_v24, %v851_v22 }
 0x251   : > { %v977_v28 = vpop.f32.mrf.mxu1 }
 0x252   : > { %v964_v27 = vpop.f32.mrf.mxu0  ;;  %v982_v29 = vadd.f32 %v977_v28, %v907_v26 }
 0x253   : > { %v981_v30 = vadd.f32 %v964_v27, %v906_v25 }
 0x254   : > { %v985_v31 = vrot.slane %v982_v29, 4 }
 0x256   : > { %v986_v32 = vsel %vm410_vm1, %v981_v30, %v985_v31 }
 0x257   : > { %v904_v33 = vpop.f32.mrf.mxu3  ;;  %v891_v37 = vpop.f32.mrf.mxu2  ;;  %988 = vst [vmem:[%s205_s12] sm:$0xff] %v986_v32 }
 0x258   : > { %1200 = shalt.err (!%p1197_p3)
}
 0x259   : > { %1124 = dma.vmem_to_hbm [thread:$0]  (%p1310_p5), %s1004_s13, 128, %s1006_s14, %s990_s19   ;;  %v979_v35 = vpop.f32.mrf.mxu1 }
 0x25a   : > { %v966_v34 = vpop.f32.mrf.mxu0 }
 0x25b PF: > { %p1130_p4 = scmp.ge.s32.totalorder %s1235_s18, 2  ;;  %s1017_s5 = sand.u32 1, %s1223_s15  }
 0x25c   : > { %s1018_s6 = scalar_lea.sflag [#allocation4], %s1017_s5 }
 0x25d   : > { %p1127_p7 = pnand %p1130_p4, %p1314_p6 }
 0x25f   : > { %p1128_p8 = pneg %p1127_p7 }
 0x261   : > { %1218 = dma.done.wait (%p1128_p8), %s1018_s6, 128  }
 0x262   : > { %1220 = vsyncadd (%p1128_p8), %s1018_s6, 4294967168  ;;  %p14_p5 = scmp.ge.s32.totalorder %s1297_s21, 4   ;;  %s1678_s15 = smov %s1227_s16 }
 0x263   : > { %s1679_s16 = smov %s1231_s17  ;;  %s1680_s17 = smov %s1308_s24 }
 0x264   : > { %s1681_s18 = smov %s1297_s21  ;;  %16 = sbr.rel (!%p14_p5) target bundleno = 3 (0x3), region = 82 }
 0x269   :  { %1024 = vsyncpa [#allocation4], 1 }
 0x26a   :  { %1026 = vsyncpa [#allocation4 + $0x1], 1 }

</bundles_post_ra>
